<compile_context>
chip_gen: v7x
topology: tpu7x:2x2x1
jax: 0.10.0
libtpu: 0.0.40
codegen_flags: <defaults>
</compile_context>

<pallas_src>
import itertools

import numpy as np
import jax
import jax.numpy as jnp
from jax.experimental import pallas as pl
from jax.experimental.pallas import tpu as pltpu


def _round_up(a, b):
    return ((a + b - 1) // b) * b


def _cdist_kernel(x_ref, yt_ref, ysq_ref, o_ref):
    """Euclidean distance tile.

    x_ref  : (tm, Dp)  query rows
    yt_ref : (Dp, tn)  target points, pre-transposed (contraction-ready)
    ysq_ref: (1,  tn)  precomputed ||y||^2
    o_ref  : (tm, tn)  distances
    """
    x = x_ref[...]
    xf = x.astype(jnp.float32)
    xn = jnp.sum(xf * xf, axis=-1, keepdims=True)                 # (tm, 1), VPU
    # MXU: plain (tm, Dp) @ (Dp, tn) contraction, native operand dtype, f32 acc.
    xy = jnp.dot(x, yt_ref[...], preferred_element_type=jnp.float32)
    d2 = jnp.maximum(xn + ysq_ref[...] - 2.0 * xy, 0.0)
    o_ref[...] = jnp.sqrt(d2).astype(o_ref.dtype)


def pallas_cdist(x, y, tm=256, tn=256):
    """torch.cdist(x, y, p=2) equivalent. x: (M, D), y: (N, D) -> (M, N) float32."""
    M, D = x.shape
    N, Dy = y.shape
    assert D == Dy

    # Zero-pad: D to lane width (distances unchanged), M/N up to full tiles.
    Dp = _round_up(D, 128)
    tm = min(tm, _round_up(M, 8))       # multiple of 8 (sublane)
    tn = min(tn, _round_up(N, 128))     # multiple of 128 (lane-dense output)
    Mp = _round_up(M, tm)
    Np = _round_up(N, tn)

    xp = jnp.pad(x, ((0, Mp - M), (0, Dp - D)))
    ypT = jnp.pad(y, ((0, Np - N), (0, Dp - D))).T                 # (Dp, Np)
    ysq = jnp.sum(ypT.astype(jnp.float32) ** 2, axis=0, keepdims=True)  # (1, Np)

    grid = (Mp // tm, Np // tn)
    cost = pl.CostEstimate(
        flops=2 * Mp * Np * Dp,
        transcendentals=Mp * Np,
        bytes_accessed=(Mp * Dp + Np * Dp + Mp * Np) * 4,
    )

    out = pl.pallas_call(
        _cdist_kernel,
        out_shape=jax.ShapeDtypeStruct((Mp, Np), jnp.float32),
        grid_spec=pltpu.PrefetchScalarGridSpec(
            num_scalar_prefetch=0,
            grid=grid,
            in_specs=[
                pl.BlockSpec((tm, Dp), lambda i, j: (i, 0)),   # query row tile
                pl.BlockSpec((Dp, tn), lambda i, j: (0, j)),   # point column tile
                pl.BlockSpec((1, tn), lambda i, j: (0, j)),    # precomputed ||y||^2
            ],
            out_specs=pl.BlockSpec((tm, tn), lambda i, j: (i, j)),
        ),
        compiler_params=pltpu.CompilerParams(
            dimension_semantics=("parallel", "parallel")),
        cost_estimate=cost,
    )(xp, ypT, ysq)
    return out[:M, :N]


def _linear_sum_assignment_hungarian(cost):
    """Exact minimum-cost assignment, O(n^3) Hungarian (host-side, numpy)."""
    # TODO(synk): linear_sum_assignment is a sequential, data-dependent scalar
    # algorithm with no clean Pallas equivalent; solved exactly on the host.
    cost = np.asarray(cost, dtype=np.float64)
    n, m = cost.shape
    assert n == m, "synthetic setup uses a square cost matrix"
    INF = float("inf")
    u = np.zeros(n + 1)
    v = np.zeros(m + 1)
    p = np.zeros(m + 1, dtype=np.int64)
    way = np.zeros(m + 1, dtype=np.int64)
    for i in range(1, n + 1):
        p[0] = i
        j0 = 0
        minv = np.full(m + 1, INF)
        used = np.zeros(m + 1, dtype=bool)
        while True:
            used[j0] = True
            i0 = p[j0]
            delta, j1 = INF, 0
            for j in range(1, m + 1):
                if not used[j]:
                    cur = cost[i0 - 1, j - 1] - u[i0] - v[j]
                    if cur < minv[j]:
                        minv[j] = cur
                        way[j] = j0
                    if minv[j] < delta:
                        delta = minv[j]
                        j1 = j
            for j in range(m + 1):
                if used[j]:
                    u[p[j]] += delta
                    v[j] -= delta
                else:
                    minv[j] -= delta
            j0 = j1
            if p[j0] == 0:
                break
        while True:
            j1 = way[j0]
            p[j0] = p[j1]
            j0 = j1
            if j0 == 0:
                break
    row_ind = np.arange(n)
    col_ind = np.zeros(n, dtype=np.int64)
    for j in range(1, m + 1):
        if p[j] != 0:
            col_ind[p[j] - 1] = j - 1
    return row_ind, col_ind


def minimum_matching(x_old, x_new, epsilon):
    if x_old is None:
        return x_new
    weights = pallas_cdist(x_old, x_new)                           # Pallas hot path
    # TODO(synk): np.asarray forces a device->host sync; could be overlapped with
    # the x-side work if the surrounding program allows.
    _, col_ind = _linear_sum_assignment_hungarian(np.asarray(weights))
    return (1.0 - epsilon) * x_old + epsilon * x_new[col_ind]


def best_matching_forward(x, old_points, new_points, theta):
    eps = jnp.cos(theta) ** 2
    point_update = minimum_matching(old_points, new_points, eps)
    return pallas_cdist(x, point_update)                           # Pallas hot path


def _np_cdist(a, b):
    a = np.asarray(a, np.float64)
    b = np.asarray(b, np.float64)
    return np.sqrt(((a[:, None, :] - b[None, :, :]) ** 2).sum(-1))


if __name__ == "__main__":
    M, P, D = 16, 8, 32
    key = jax.random.PRNGKey(0)
    k1, k2, k3 = jax.random.split(key, 3)

    x = jax.random.normal(k1, (M, D), jnp.float32)
    old_points = jax.random.normal(k2, (P, D), jnp.float32)
    new_points = jax.random.normal(k3, (P, D), jnp.float32)

    # One-off sanity check of the Hungarian solver against brute force (P=8).
    w_chk = _np_cdist(old_points, new_points)
    rows = np.arange(P)
    best_cost = min(w_chk[rows, list(perm)].sum()
                    for perm in itertools.permutations(range(P)))
    _, col_h = _linear_sum_assignment_hungarian(w_chk)
    assert abs(w_chk[rows, col_h].sum() - best_cost) < 1e-9

    # theta = pi/2 is the module's parameter init; pi/4 also exercises the
    # assignment-dependent branch (eps = 0.5).
    for theta_val in (np.pi / 2, np.pi / 4):
        theta = jnp.float32(theta_val)
        out = jax.block_until_ready(
            best_matching_forward(x, old_points, new_points, theta))
        assert out.shape == (M, P) and out.dtype == jnp.float32

        # Reference: same math in numpy (including the assignment step).
        eps_ref = float(np.cos(np.float32(theta_val)) ** 2)
        w_ref = _np_cdist(old_points, new_points)
        _, col_ref = _linear_sum_assignment_hungarian(w_ref)
        pu_ref = ((1.0 - eps_ref) * np.asarray(old_points)
                  + eps_ref * np.asarray(new_points)[col_ref])
        ref = _np_cdist(x, pu_ref)
        np.testing.assert_allclose(np.asarray(out), ref, rtol=1e-4, atol=1e-3)

    print("KERNEL_OK")
</pallas_src>

<mosaic_0001>
module attributes {stable_mosaic.version = 11 : i64} {
  func.func @_cdist_kernel(%arg0: i32, %arg1: i32, %arg2: memref<8x128xf32, #tpu.memory_space<vmem>>, %arg3: memref<128x128xf32, #tpu.memory_space<vmem>>, %arg4: memref<1x128xf32, #tpu.memory_space<vmem>>, %arg5: memref<8x128xf32, #tpu.memory_space<vmem>>) attributes {dimension_semantics = [#tpu.dimension_semantics<parallel>, #tpu.dimension_semantics<parallel>], iteration_bounds = array<i64: 1, 1>, scalar_prefetch = 0 : i64, scratch_operands = 0 : i64, tpu.core_type = #tpu.core_type<tc>, window_params = [{transform_indices = @transform_0, window_bounds = array<i64: 8, 128>}, {transform_indices = @transform_1, window_bounds = array<i64: 128, 128>}, {transform_indices = @transform_2, window_bounds = array<i64: 1, 128>}, {transform_indices = @transform_3, window_bounds = array<i64: 8, 128>}]} {
    %c0 = arith.constant 0 : index
    %c0_0 = arith.constant 0 : index
    %0 = vector.load %arg2[%c0, %c0_0] : memref<8x128xf32, #tpu.memory_space<vmem>>, vector<8x128xf32>
    %1 = arith.mulf %0, %0 : vector<8x128xf32>
    %cst = arith.constant dense<0.000000e+00> : vector<8xf32>
    %2 = vector.multi_reduction <add>, %1, %cst [1] : vector<8x128xf32> to vector<8xf32>
    %3 = vector.shape_cast %2 : vector<8xf32> to vector<8x1xf32>
    %c0_1 = arith.constant 0 : index
    %c0_2 = arith.constant 0 : index
    %4 = vector.load %arg3[%c0_1, %c0_2] : memref<128x128xf32, #tpu.memory_space<vmem>>, vector<128x128xf32>
    %cst_3 = arith.constant dense<0.000000e+00> : vector<8x128xf32>
    %5 = tpu.matmul %0, %4, %cst_3 {dimension_numbers = #tpu.dot_dimension_numbers<[1], [0], [0], [1], [0, 0, 1, 1], [], []>} : vector<8x128xf32>, vector<128x128xf32>, vector<8x128xf32> -> vector<8x128xf32>
    %c0_4 = arith.constant 0 : index
    %c0_5 = arith.constant 0 : index
    %6 = vector.load %arg4[%c0_4, %c0_5] : memref<1x128xf32, #tpu.memory_space<vmem>>, vector<1x128xf32>
    %7 = vector.broadcast %3 : vector<8x1xf32> to vector<8x128xf32>
    %8 = vector.broadcast %6 : vector<1x128xf32> to vector<8x128xf32>
    %9 = arith.addf %7, %8 : vector<8x128xf32>
    %cst_6 = arith.constant 2.000000e+00 : f32
    %10 = vector.broadcast %cst_6 : f32 to vector<8x128xf32>
    %11 = arith.mulf %10, %5 : vector<8x128xf32>
    %12 = arith.subf %9, %11 : vector<8x128xf32>
    %cst_7 = arith.constant 0.000000e+00 : f32
    %13 = vector.broadcast %cst_7 : f32 to vector<8x128xf32>
    %14 = arith.maximumf %12, %13 : vector<8x128xf32>
    %15 = math.sqrt %14 : vector<8x128xf32>
    %c0_8 = arith.constant 0 : index
    %c0_9 = arith.constant 0 : index
    %16 = vector.load %arg5[%c0_8, %c0_9] : memref<8x128xf32, #tpu.memory_space<vmem>>, vector<8x128xf32>
    tpu.vector_store %arg5[%c0_8, %c0_9], %15 {strides = array<i32>} : memref<8x128xf32, #tpu.memory_space<vmem>>, vector<8x128xf32>,
    return
  }
  func.func @transform_0(%arg0: i32, %arg1: i32) -> (i32, i32) {
    %c0_i32 = arith.constant 0 : i32
    %c0_i32_0 = arith.constant 0 : i32
    return %arg0, %c0_i32 : i32, i32
  }
  func.func @transform_1(%arg0: i32, %arg1: i32) -> (i32, i32) {
    %c0_i32 = arith.constant 0 : i32
    %c0_i32_0 = arith.constant 0 : i32
    return %c0_i32, %arg1 : i32, i32
  }
  func.func @transform_2(%arg0: i32, %arg1: i32) -> (i32, i32) {
    %c0_i32 = arith.constant 0 : i32
    %c0_i32_0 = arith.constant 0 : i32
    return %c0_i32, %arg1 : i32, i32
  }
  func.func @transform_3(%arg0: i32, %arg1: i32) -> (i32, i32) {
    %c0_i32 = arith.constant 0 : i32
    return %arg0, %arg1 : i32, i32
  }
}

</mosaic_0001>

<bundles_post_ra>
// kernel: tpu_custom_call.1
= control target key start
LH: loop header
LB: loop body
LE: loop exit
PB: predicated region body
PF: predicated region fallthrough
CT: control target
= control target key end

     0   :  { %8 = vsyncpa [#allocation3], 0  ;;  %s399_s0 = inlined_call_operand.hbm [shape: f32[8,128], index: 0, kind: input, shape index: {}]   ;;  %s400_s1 = inlined_call_operand.hbm [shape: f32[128,128], index: 1, kind: input, shape index: {}]   ;;  %s401_s2 = inlined_call_operand.vmem [shape: f32[1,128], index: 2, kind: input, shape index: {}]   ;;  %s402_s3 = inlined_call_operand.hbm [shape: f32[8,128], index: 3, kind: output, shape index: {}]  }
   0x1   :  { %9 = vsyncpa [#allocation6], 0 }
   0x2   :  { %10 = vsyncpa [#allocation4], 0  ;;  %s325_s12 = smov [#allocation2]   ;;  %s326_s14 = smov [#allocation5]  }
   0x3   :  { %s17_s13 = sshll.u32 %s325_s12, 4  ;;  %s26_s15 = sshll.u32 %s326_s14, 4  ;;  %s18_s13 = int_to_ptr.vmem [resolvable:$true] %s17_s13  ;;  %s353_s15 = int_to_ptr.vmem [resolvable:$true] %s26_s15 }
   0x4   :  { %s253_s18 = scalar_lea.hbm %s399_s0, 128 }
   0x5   :  { %p254_p0 = scmp.ne.s32.totalorder %s399_s0, %s253_s18  ;;  %p257_p1 = scmp.lt.u32.totalorder %s253_s18, %s399_s0 }
   0x7   :  { %p259_p2 = pnand %p257_p1, %p254_p0 }
   0x9   :  { %262 = shalt.err (!%p259_p2)
}
   0xa   :  { %s263_s23 = scalar_lea.vmem %s18_s13, 128  ;;  %p268_p4 = scmp.lt.s32.totalorder %s18_s13, %s18_s13 }
   0xb   :  { %p264_p3 = scmp.ne.s32.totalorder %s18_s13, %s263_s23  ;;  %p269_p5 = scmp.lt.s32.totalorder %s263_s23, %s263_s23 }
   0xd   :  { %p270_p6 = por %p269_p5, %p268_p4 }
   0xf   :  { %p271_p7 = pnand %p270_p6, %p264_p3 }
  0x11   :  { %274 = shalt.err (!%p271_p7)
}
  0x12   :  { %20 = dma.hbm_to_vmem [thread:$0]  %s399_s0, 128, %s18_s13, [#allocation3]  }
  0x13   :  { %s275_s28 = scalar_lea.hbm %s400_s1, 2048 }
  0x14   :  { %p276_p8 = scmp.ne.s32.totalorder %s400_s1, %s275_s28  ;;  %p279_p9 = scmp.lt.u32.totalorder %s275_s28, %s400_s1 }
  0x16   :  { %p281_p10 = pnand %p279_p9, %p276_p8 }
  0x18   :  { %284 = shalt.err (!%p281_p10)
}
  0x19   :  { %s285_s6 = scalar_lea.vmem %s353_s15, 2048  ;;  %p290_p12 = scmp.lt.s32.totalorder %s353_s15, %s353_s15 }
  0x1a   :  { %p286_p11 = scmp.ne.s32.totalorder %s353_s15, %s285_s6  ;;  %p291_p13 = scmp.lt.s32.totalorder %s285_s6, %s285_s6 }
  0x1c   :  { %p292_p0 = por %p291_p13, %p290_p12 }
  0x1e   :  { %p293_p1 = pnand %p292_p0, %p286_p11 }
  0x20   :  { %296 = shalt.err (!%p293_p1)
}
  0x21   :  { %s327_s0 = smov 128   ;;  %s328_s7 = smov 8  }
  0x22   :  { %32 = dma.hbm_to_vmem [thread:$0]  %s400_s1, 2048, %s353_s15, [#allocation6], %s327_s0, %s327_s0, %s328_s7  }
  0x23   :  { %319 = dma.done.wait [#allocation3], 128  }
  0x24   :  { %320 = vsyncadd [#allocation3], 4294967168 }
  0x25   :  { %321 = dma.done.wait [#allocation6], 2048  }
  0x26   :  { %322 = vsyncadd [#allocation6], 4294965248  ;;  %v329_v0 = vmov 0.0|0.0   ;;  %vm330_vm0 = vmmov 0   ;;  %v331_v1 = vmov 0.0   ;;  %v45_v2 = vld [vmem:[#allocation5] sm:$0xff] }
  0x27   :  { %219 = vmatprep.subr.bf16.mxu0 %v329_v0  ;;  %216 = vmatprep.mubr.msk.f32.mxu0 %vm330_vm0, %v331_v1  ;;  %v46_v3 = vld [vmem:[#allocation5 + $0x8] sm:$0xff]  ;;  %v47_v4 = vld [vmem:[#allocation5 + $0x10] sm:$0xff]  ;;  %v48_v6 = vld [vmem:[#allocation5 + $0x18] sm:$0xff]  ;;  %s332_s11 = smov [#allocation7]  }
  0x28   :  { %v220_v5 = vpack.c.bf16 %v46_v3, %v45_v2  ;;  %v223_v7 = vpack.c.bf16 %v48_v6, %v47_v4  ;;  %v49_v8 = vld [vmem:[#allocation5 + $0x20] sm:$0xff]  ;;  %v50_v9 = vld [vmem:[#allocation5 + $0x28] sm:$0xff]  ;;  %v41_v10 = vld [vmem:[#allocation2] sm:$0xff]  ;;  %s156_s12 = sshll.u32 %s332_s11, 4  ;;  %s157_s12 = int_to_ptr.vmem [resolvable:$true] %s156_s12 }
  0x29   :  { %v42_v11 = vmul.f32 %v41_v10, %v41_v10  ;;  %v226_v12 = vpack.c.bf16 %v50_v9, %v49_v8  ;;  %v51_v13 = vld [vmem:[#allocation5 + $0x30] sm:$0xff]  ;;  %v52_v14 = vld [vmem:[#allocation5 + $0x38] sm:$0xff]  ;;  %v53_v16 = vld [vmem:[#allocation5 + $0x40] sm:$0xff]  ;;  %s297_s13 = scalar_lea.vmem %s157_s12, 128  ;;  %p302_p3 = scmp.lt.s32.totalorder %s157_s12, %s157_s12 }
  0x2a   :  { %221 = vmatpush3.bf16.msra.mxu0 %v220_v5  ;;  %v229_v15 = vpack.c.bf16 %v52_v14, %v51_v13  ;;  %v54_v17 = vld [vmem:[#allocation5 + $0x48] sm:$0xff]  ;;  %v55_v19 = vld [vmem:[#allocation5 + $0x50] sm:$0xff]  ;;  %v56_v20 = vld [vmem:[#allocation5 + $0x58] sm:$0xff]  ;;  %p298_p2 = scmp.ne.s32.totalorder %s157_s12, %s297_s13  ;;  %p303_p4 = scmp.lt.s32.totalorder %s297_s13, %s297_s13 }
  0x2b   :  { %222 = vmatprep.subr.bf16.mxu0 %v329_v0  ;;  %43 = vadd.xlane.f32.xlu0 %v42_v11  ;;  %v232_v18 = vpack.c.bf16 %v54_v17, %v53_v16  ;;  %v235_v21 = vpack.c.bf16 %v56_v20, %v55_v19  ;;  %v57_v22 = vld [vmem:[#allocation5 + $0x60] sm:$0xff]  ;;  %v58_v23 = vld [vmem:[#allocation5 + $0x68] sm:$0xff]  ;;  %v59_v25 = vld [vmem:[#allocation5 + $0x70] sm:$0xff] }
  0x2c   :  { %v238_v24 = vpack.c.bf16 %v58_v23, %v57_v22  ;;  %v60_v26 = vld [vmem:[#allocation5 + $0x78] sm:$0xff]  ;;  %p304_p5 = por %p303_p4, %p302_p3 }
  0x2d   :  { %v241_v27 = vpack.c.bf16 %v60_v26, %v59_v25  ;;  %v166_v29 = vld [vmem:[%s401_s2] ss:$0 sm:$0xff] }
  0x2e   :  { %224 = vmatpush3.bf16.msra.mxu0 %v223_v7  ;;  %p305_p6 = pnand %p304_p5, %p298_p2 }
  0x2f   :  { %225 = vmatprep.subr.bf16.mxu0 %v329_v0 }
  0x32   :  { %227 = vmatpush3.bf16.msra.mxu0 %v226_v12 }
  0x33   :  { %228 = vmatprep.subr.bf16.mxu0 %v329_v0 }
  0x36   :  { %230 = vmatpush3.bf16.msra.mxu0 %v229_v15 }
  0x37   :  { %231 = vmatprep.subr.bf16.mxu0 %v329_v0 }
  0x3a   :  { %233 = vmatpush3.bf16.msra.mxu0 %v232_v18 }
  0x3b   :  { %234 = vmatprep.subr.bf16.mxu0 %v329_v0 }
  0x3e   :  { %236 = vmatpush3.bf16.msra.mxu0 %v235_v21 }
  0x3f   :  { %237 = vmatprep.subr.bf16.mxu0 %v329_v0 }
  0x42   :  { %239 = vmatpush3.bf16.msra.mxu0 %v238_v24 }
  0x43   :  { %240 = vmatprep.subr.bf16.mxu0 %v329_v0 }
  0x46   :  { %242 = vmatpush3.bf16.msra.mxu0 %v241_v27 }
  0x49   :  { %217 = vmatmul.mubr.f32.vlgmr.msra.gmra.mrb[0].mxu0 %v41_v10 }
  0xb8   :  { %v44_v28 = vpop.xlane.xlu0 %43 }
  0xb9   :  { %v138_v30 = vadd.f32 %v166_v29, %v44_v28 }
 0x11c   :  { %v127_v31 = vpop.f32.mrb[0].mxu0 }
 0x11d   :  { %v139_v32 = vmul.f32 2.0, %v127_v31  ;;  %v218_v33 = vpop.f32.mrb[1].mxu0 }
 0x11f   :  { %v140_v34 = vsub.f32 %v138_v30, %v139_v32 }
 0x121   :  { %v141_v35 = vmax.f32 %v140_v34, 0.0 }
 0x123   :  { %251 = vrsqrt.f32 %v141_v35  ;;  %vm144_vm1 = vcmp.eq.f32.partialorder %v141_v35, inf  ;;  %v147_v38 = vand.u32 2147483648, %v141_v35  ;;  %vm146_vm2 = vcmp.eq.f32.partialorder %v141_v35, 0.0 }
 0x12d   :  { %v252_v36 = vpop.eup %251 }
 0x12e   :  { %v143_v37 = vmul.f32 %v252_v36, %v141_v35 }
 0x130   :  { %v145_v39 = vsel %vm144_vm1, %v141_v35, %v143_v37 }
 0x131   :  { %v148_v40 = vsel %vm146_vm2, %v147_v38, %v145_v39 }
 0x132   :  { %149 = vst [vmem:[#allocation7] sm:$0xff] %v148_v40 }
 0x133   :  { %308 = shalt.err (!%p305_p6)
}
 0x134   :  { %s309_s15 = scalar_lea.hbm %s402_s3, 128 }
 0x135   :  { %p310_p7 = scmp.ne.s32.totalorder %s402_s3, %s309_s15  ;;  %p313_p8 = scmp.lt.u32.totalorder %s309_s15, %s402_s3 }
 0x137   :  { %p315_p9 = pnand %p313_p8, %p310_p7 }
 0x139   :  { %318 = shalt.err (!%p315_p9)
}
 0x13a   :  { %159 = dma.vmem_to_hbm [thread:$0]  %s157_s12, 128, %s402_s3, [#allocation4]  }
 0x13b   :  { %323 = dma.done.wait [#allocation4], 128  }
 0x13c   :  { %324 = vsyncadd [#allocation4], 4294967168 }
 0x13d   :  { %163 = vsyncpa [#allocation3], 1 }
 0x13e   :  { %164 = vsyncpa [#allocation6], 1 }
 0x13f   :  { %165 = vsyncpa [#allocation4], 1 }

</bundles_post_ra>
